<compile_context>
chip_gen: v7x
topology: tpu7x:2x2x1
jax: 0.10.0
libtpu: 0.0.40
codegen_flags: <defaults>
</compile_context>

<pallas_src>
import functools
import math

import jax
import jax.numpy as jnp
import numpy as np
from jax.experimental import pallas as pl
from jax.experimental.pallas import tpu as pltpu


def _round_up(x, m):
    return -(-x // m) * m


def _pick_tile_pixels(hw, c, ce, cls_bytes, edge_bytes, lab_bytes,
                      budget_bytes, max_tile):
    """Largest lane-width (multiple of 128) whose working set fits the budget."""
    per_px = (2 * (c * cls_bytes + ce * edge_bytes + lab_bytes)  # dbl-buffered inputs
              + 3 * c * 4                                        # (C, TP) accumulators
              + 6 * c * 4)                                       # f32 temp headroom
    tp = int(budget_bytes // per_px)
    tp = max(128, (tp // 128) * 128)
    tp = min(tp, max_tile, _round_up(hw, 128))
    return tp


def _edge_att_loss_kernel(cls_ref, lab_ref, edge_ref,
                          hist_out, num_out, cnt_out,
                          hist_acc, num_acc, cnt_acc, *,
                          thr_logit, ignore_index, hw, tiles_per_split):
    s = pl.program_id(0)          # pixel-split (megacore) axis
    t = pl.program_id(2)          # pixel-tile axis (reduction, innermost)

    @pl.when(t == 0)
    def _():
        hist_acc[...] = jnp.zeros_like(hist_acc)
        num_acc[...] = jnp.zeros_like(num_acc)
        cnt_acc[...] = jnp.zeros_like(cnt_acc)

    cls = cls_ref[...].astype(jnp.float32)        # (C, TP)  class logits
    lab = lab_ref[...].astype(jnp.int32)          # (1, TP)  labels
    edge = edge_ref[...].astype(jnp.float32)      # (Ce, TP) edge logits

    C, TP = cls.shape

    # Tail mask: lanes past HW (partial last block / duplicated split block)
    # contribute zero everywhere, including the histogram.
    tile_id = s * tiles_per_split + t
    lane = jax.lax.broadcasted_iota(jnp.int32, (1, TP), 1)
    inb = (tile_id * TP + lane) < hw                                    # (1, TP)

    # sigmoid(max(edge)) > threshold  <=>  max(edge) > logit(threshold)
    gate = jnp.max(edge, axis=0, keepdims=True) > thr_logit             # (1, TP)
    valid = inb & gate & (lab != ignore_index)                          # (1, TP)

    # logsumexp over the class (sublane) axis, f32
    m = jnp.max(cls, axis=0, keepdims=True)                             # (1, TP)
    lse = m + jnp.log(jnp.sum(jnp.exp(cls - m), axis=0, keepdims=True))

    class_ids = jax.lax.broadcasted_iota(jnp.int32, (C, TP), 0)
    eq = class_ids == lab                                               # (C, TP)
    sel = eq & valid                                                    # (C, TP)

    # Per-class streaming accumulators (elementwise adds only; the cross-lane
    # reduction happens once, in the epilogue).
    hist_acc[...] += jnp.where(eq & inb, 1.0, 0.0)       # histc(label) per class
    cnt_acc[...] += jnp.where(sel, 1.0, 0.0)             # gated valid px per class
    num_acc[...] += jnp.where(sel, lse - cls, 0.0)       # unweighted CE per class

    @pl.when(t == pl.num_programs(2) - 1)
    def _():
        hist_out[...] = jnp.sum(hist_acc[...], axis=1, keepdims=True)
        num_out[...] = jnp.sum(num_acc[...], axis=1, keepdims=True)
        cnt_out[...] = jnp.sum(cnt_acc[...], axis=1, keepdims=True)


def edge_attention_loss(cls_score, label, edge, *, num_classes, threshold=0.8,
                        norm=False, upper_bound=1.0, loss_weight=1.0,
                        ignore_index=255, vmem_budget_bytes=24 << 20,
                        max_tile_pixels=32768):
    N, C, H, W = cls_score.shape
    assert C == num_classes
    assert edge.ndim == 4, f"edge shape should be 4dim, {edge.shape}"
    assert edge.shape[0] == N and edge.shape[2:] == (H, W)
    assert 0.0 < threshold < 1.0
    Ce = edge.shape[1]
    HW = H * W

    cls_b = jnp.dtype(cls_score.dtype).itemsize
    edge_b = jnp.dtype(edge.dtype).itemsize
    lab_b = jnp.dtype(label.dtype).itemsize

    TP = _pick_tile_pixels(HW, C, Ce, cls_b, edge_b, lab_b,
                           vmem_budget_bytes, max_tile_pixels)
    num_tiles = -(-HW // TP)

    # 2-way split of the pixel-tile axis -> extra "parallel" axis so both v7x
    # TensorCores are used even when N == 1. Only when the tile count splits
    # evenly (avoids out-of-range block indices); otherwise unsplit.
    S = 2 if (num_tiles >= 2 and num_tiles % 2 == 0) else 1
    T2 = num_tiles // S

    # Class-major / pixel-on-lane layout straight from NCHW (no transpose, no pad).
    cls3 = cls_score.reshape(N, C, HW)
    edge3 = edge.reshape(N, Ce, HW)
    lab3 = label.reshape(N, 1, HW)          # native dtype; widened per-tile in kernel

    thr_logit = float(math.log(threshold) - math.log1p(-threshold))

    kern = functools.partial(
        _edge_att_loss_kernel,
        thr_logit=thr_logit,
        ignore_index=int(ignore_index),
        hw=int(HW),
        tiles_per_split=int(T2))

    idx_in = lambda s, n, t: (n, 0, s * T2 + t)
    idx_out = lambda s, n, t: (s, n, 0, 0)

    hist_parts, num_parts, cnt_parts = pl.pallas_call(
        kern,
        grid_spec=pltpu.PrefetchScalarGridSpec(
            num_scalar_prefetch=0,
            grid=(S, N, T2),
            in_specs=[
                pl.BlockSpec((None, C, TP), idx_in),     # cls logits
                pl.BlockSpec((None, 1, TP), idx_in),     # label
                pl.BlockSpec((None, Ce, TP), idx_in),    # edge logits
            ],
            out_specs=[
                pl.BlockSpec((None, None, C, 1), idx_out),
                pl.BlockSpec((None, None, C, 1), idx_out),
                pl.BlockSpec((None, None, C, 1), idx_out),
            ],
            scratch_shapes=[pltpu.VMEM((C, TP), jnp.float32),
                            pltpu.VMEM((C, TP), jnp.float32),
                            pltpu.VMEM((C, TP), jnp.float32)],
        ),
        out_shape=[jax.ShapeDtypeStruct((S, N, C, 1), jnp.float32),
                   jax.ShapeDtypeStruct((S, N, C, 1), jnp.float32),
                   jax.ShapeDtypeStruct((S, N, C, 1), jnp.float32)],
        compiler_params=pltpu.CompilerParams(
            dimension_semantics=("parallel", "parallel", "arbitrary"),
            vmem_limit_bytes=48 << 20),
    )(cls3, lab3, edge3)

    # Tiny final combine in plain JAX: build class weights from the fused
    # histogram, then weight the per-class partial sums.
    hist = jnp.sum(hist_parts, axis=(0, 1)).reshape(num_classes)
    num_pc = jnp.sum(num_parts, axis=(0, 1)).reshape(num_classes)
    cnt_pc = jnp.sum(cnt_parts, axis=(0, 1)).reshape(num_classes)

    total = jnp.sum(hist)
    hist_norm = hist / total
    nonzero = (hist != 0).astype(jnp.float32)
    if norm:
        # Empty classes get weight 1 instead of torch's (unused) NaN; the loss
        # is identical because those classes never appear in the target.
        safe = jnp.where(hist != 0, hist, 1.0)
        wvec = jnp.where(hist != 0, upper_bound * (total / safe) + 1.0, 1.0)
    else:
        wvec = nonzero * upper_bound * (1.0 - hist_norm) + 1.0

    num = jnp.sum(wvec * num_pc)
    den = jnp.sum(wvec * cnt_pc)
    # NOTE: if no pixel passes the edge gate this is 0/0 = NaN, matching PyTorch.
    return loss_weight * num / den


def _reference_loss(cls_score, label, edge, *, num_classes, threshold, norm,
                    upper_bound, loss_weight, ignore_index):
    """Pure-JAX reference mirroring the PyTorch module."""
    lab_flat = label.reshape(-1)
    counts = jnp.sum(jax.nn.one_hot(lab_flat, num_classes, dtype=jnp.float32),
                     axis=0)
    hist_norm = counts / jnp.sum(counts)
    nonzero = (counts != 0).astype(jnp.float32)
    if norm:
        wvec = jnp.where(counts != 0, upper_bound * (1.0 / hist_norm) + 1.0, 1.0)
    else:
        wvec = nonzero * upper_bound * (1.0 - hist_norm) + 1.0

    edge_max = jnp.max(jax.nn.sigmoid(edge), axis=1)                 # (N,H,W)
    target = jnp.where(edge_max > threshold, label,
                       jnp.full_like(label, ignore_index))
    t_flat = target.reshape(-1)
    valid = (t_flat != ignore_index)
    safe_t = jnp.where(valid, t_flat, 0)

    logits = jnp.transpose(cls_score, (0, 2, 3, 1)).reshape(-1, num_classes)
    logp = jax.nn.log_softmax(logits, axis=-1)
    logp_t = jnp.take_along_axis(logp, safe_t[:, None], axis=-1)[:, 0]
    w_t = wvec[safe_t]
    num = jnp.sum(jnp.where(valid, -w_t * logp_t, 0.0))
    den = jnp.sum(jnp.where(valid, w_t, 0.0))
    return loss_weight * num / den


if __name__ == "__main__":
    key = jax.random.PRNGKey(0)
    k1, k2, k3, k4 = jax.random.split(key, 4)

    N, num_classes, H, W = 2, 8, 16, 16
    Ce = 2

    cls_score = jax.random.normal(k1, (N, num_classes, H, W), dtype=jnp.float32)
    label = jax.random.randint(k2, (N, H, W), 0, num_classes, dtype=jnp.int32)
    # sprinkle some ignore pixels (255)
    ign_mask = jax.random.uniform(k3, (N, H, W)) < 0.1
    label = jnp.where(ign_mask, jnp.int32(255), label)
    edge = 3.0 * jax.random.normal(k4, (N, Ce, H, W), dtype=jnp.float32)

    params = dict(num_classes=num_classes, threshold=0.8, norm=False,
                  upper_bound=1.0, loss_weight=1.0, ignore_index=255)

    loss = edge_attention_loss(cls_score, label, edge, **params)
    jax.block_until_ready(loss)

    ref = _reference_loss(cls_score, label, edge, **params)
    np.testing.assert_allclose(np.asarray(loss), np.asarray(ref),
                               rtol=1e-4, atol=1e-5)
    print("KERNEL_OK")
</pallas_src>

<mosaic_0001>
module attributes {stable_mosaic.version = 11 : i64} {
  func.func @_edge_att_loss_kernel(%arg0: i32, %arg1: i32, %arg2: i32, %arg3: memref<1x8x256xf32, #tpu.memory_space<vmem>>, %arg4: memref<1x1x256xi32, #tpu.memory_space<vmem>>, %arg5: memref<1x2x256xf32, #tpu.memory_space<vmem>>, %arg6: memref<1x1x8x1xf32, #tpu.memory_space<vmem>>, %arg7: memref<1x1x8x1xf32, #tpu.memory_space<vmem>>, %arg8: memref<1x1x8x1xf32, #tpu.memory_space<vmem>>, %arg9: memref<8x256xf32, #tpu.memory_space<vmem>>, %arg10: memref<8x256xf32, #tpu.memory_space<vmem>>, %arg11: memref<8x256xf32, #tpu.memory_space<vmem>>) attributes {dimension_semantics = [#tpu.dimension_semantics<parallel>, #tpu.dimension_semantics<parallel>, #tpu.dimension_semantics<arbitrary>], iteration_bounds = array<i64: 1, 2, 1>, scalar_prefetch = 0 : i64, scratch_operands = 3 : i64, tpu.core_type = #tpu.core_type<tc>, window_params = [{transform_indices = @transform_0, window_bounds = array<i64: 1, 8, 256>}, {transform_indices = @transform_1, window_bounds = array<i64: 1, 1, 256>}, {transform_indices = @transform_2, window_bounds = array<i64: 1, 2, 256>}, {transform_indices = @transform_3, window_bounds = array<i64: 1, 1, 8, 1>}, {transform_indices = @transform_4, window_bounds = array<i64: 1, 1, 8, 1>}, {transform_indices = @transform_5, window_bounds = array<i64: 1, 1, 8, 1>}]} {
    %c0_i32 = arith.constant 0 : i32
    %0 = arith.cmpi eq, %arg2, %c0_i32 : i32
    %1 = arith.extui %0 : i1 to i32
    %c0_i32_0 = arith.constant 0 : i32
    %2 = arith.cmpi ne, %1, %c0_i32_0 : i32
    scf.if %2 {
      %cst_32 = arith.constant 0.000000e+00 : f32
      %63 = vector.broadcast %cst_32 : f32 to vector<8x256xf32>
      %c0_33 = arith.constant 0 : index
      %c0_34 = arith.constant 0 : index
      %64 = vector.load %arg9[%c0_33, %c0_34] : memref<8x256xf32, #tpu.memory_space<vmem>>, vector<8x256xf32>
      tpu.vector_store %arg9[%c0_33, %c0_34], %63 {strides = array<i32>} : memref<8x256xf32, #tpu.memory_space<vmem>>, vector<8x256xf32>,
      %cst_35 = arith.constant 0.000000e+00 : f32
      %65 = vector.broadcast %cst_35 : f32 to vector<8x256xf32>
      %c0_36 = arith.constant 0 : index
      %c0_37 = arith.constant 0 : index
      %66 = vector.load %arg10[%c0_36, %c0_37] : memref<8x256xf32, #tpu.memory_space<vmem>>, vector<8x256xf32>
      tpu.vector_store %arg10[%c0_36, %c0_37], %65 {strides = array<i32>} : memref<8x256xf32, #tpu.memory_space<vmem>>, vector<8x256xf32>,
      %cst_38 = arith.constant 0.000000e+00 : f32
      %67 = vector.broadcast %cst_38 : f32 to vector<8x256xf32>
      %c0_39 = arith.constant 0 : index
      %c0_40 = arith.constant 0 : index
      %68 = vector.load %arg11[%c0_39, %c0_40] : memref<8x256xf32, #tpu.memory_space<vmem>>, vector<8x256xf32>
      tpu.vector_store %arg11[%c0_39, %c0_40], %67 {strides = array<i32>} : memref<8x256xf32, #tpu.memory_space<vmem>>, vector<8x256xf32>,
    } else {
    }
    %c0 = arith.constant 0 : index
    %c0_1 = arith.constant 0 : index
    %c0_2 = arith.constant 0 : index
    %3 = vector.load %arg3[%c0, %c0_1, %c0_2] : memref<1x8x256xf32, #tpu.memory_space<vmem>>, vector<1x8x256xf32>
    %4 = vector.shape_cast %3 : vector<1x8x256xf32> to vector<8x256xf32>
    %c0_3 = arith.constant 0 : index
    %c0_4 = arith.constant 0 : index
    %c0_5 = arith.constant 0 : index
    %5 = vector.load %arg4[%c0_3, %c0_4, %c0_5] : memref<1x1x256xi32, #tpu.memory_space<vmem>>, vector<1x1x256xi32>
    %6 = vector.shape_cast %5 : vector<1x1x256xi32> to vector<1x256xi32>
    %c0_6 = arith.constant 0 : index
    %c0_7 = arith.constant 0 : index
    %c0_8 = arith.constant 0 : index
    %7 = vector.load %arg5[%c0_6, %c0_7, %c0_8] : memref<1x2x256xf32, #tpu.memory_space<vmem>>, vector<1x2x256xf32>
    %8 = vector.shape_cast %7 : vector<1x2x256xf32> to vector<2x256xf32>
    %c1_i32 = arith.constant 1 : i32
    %9 = arith.muli %arg0, %c1_i32 : i32
    %10 = arith.addi %9, %arg2 : i32
    %11 = tpu.iota {dimensions = array<i32: 1>} : vector<1x256xi32>
    %c256_i32 = arith.constant 256 : i32
    %12 = arith.muli %10, %c256_i32 : i32
    %13 = vector.broadcast %12 : i32 to vector<1x256xi32>
    %14 = arith.addi %13, %11 : vector<1x256xi32>
    %c256_i32_9 = arith.constant 256 : i32
    %15 = vector.broadcast %c256_i32_9 : i32 to vector<1x256xi32>
    %16 = arith.cmpi slt, %14, %15 : vector<1x256xi32>
    %cst = arith.constant dense<0xFF800000> : vector<256xf32>
    %17 = vector.multi_reduction <maximumf>, %8, %cst [0] : vector<2x256xf32> to vector<256xf32>
    %18 = vector.shape_cast %17 : vector<256xf32> to vector<1x256xf32>
    %cst_10 = arith.constant 1.38629436 : f32
    %19 = vector.broadcast %cst_10 : f32 to vector<1x256xf32>
    %20 = arith.cmpf ogt, %18, %19 : vector<1x256xf32>
    %21 = arith.andi %16, %20 : vector<1x256xi1>
    %c255_i32 = arith.constant 255 : i32
    %22 = vector.broadcast %c255_i32 : i32 to vector<1x256xi32>
    %23 = arith.cmpi ne, %6, %22 : vector<1x256xi32>
    %24 = arith.andi %21, %23 : vector<1x256xi1>
    %cst_11 = arith.constant dense<0xFF800000> : vector<256xf32>
    %25 = vector.multi_reduction <maximumf>, %4, %cst_11 [0] : vector<8x256xf32> to vector<256xf32>
    %26 = vector.shape_cast %25 : vector<256xf32> to vector<1x256xf32>
    %27 = vector.broadcast %26 : vector<1x256xf32> to vector<8x256xf32>
    %28 = arith.subf %4, %27 : vector<8x256xf32>
    %29 = math.exp %28 : vector<8x256xf32>
    %cst_12 = arith.constant dense<0.000000e+00> : vector<256xf32>
    %30 = vector.multi_reduction <add>, %29, %cst_12 [0] : vector<8x256xf32> to vector<256xf32>
    %31 = vector.shape_cast %30 : vector<256xf32> to vector<1x256xf32>
    %32 = math.log %31 : vector<1x256xf32>
    %33 = arith.addf %26, %32 : vector<1x256xf32>
    %34 = tpu.iota {dimensions = array<i32: 0>} : vector<8x256xi32>
    %35 = vector.broadcast %6 : vector<1x256xi32> to vector<8x256xi32>
    %36 = arith.cmpi eq, %34, %35 : vector<8x256xi32>
    %37 = vector.broadcast %24 : vector<1x256xi1> to vector<8x256xi1>
    %38 = arith.andi %36, %37 : vector<8x256xi1>
    %c0_13 = arith.constant 0 : index
    %c0_14 = arith.constant 0 : index
    %39 = vector.load %arg9[%c0_13, %c0_14] : memref<8x256xf32, #tpu.memory_space<vmem>>, vector<8x256xf32>
    %40 = vector.broadcast %16 : vector<1x256xi1> to vector<8x256xi1>
    %41 = arith.andi %36, %40 : vector<8x256xi1>
    %cst_15 = arith.constant 1.000000e+00 : f32
    %cst_16 = arith.constant 0.000000e+00 : f32
    %42 = vector.broadcast %cst_15 : f32 to vector<8x256xf32>
    %43 = vector.broadcast %cst_16 : f32 to vector<8x256xf32>
    %44 = arith.select %41, %42, %43 : vector<8x256xi1>, vector<8x256xf32>
    %45 = arith.addf %39, %44 : vector<8x256xf32>
    %c0_17 = arith.constant 0 : index
    %c0_18 = arith.constant 0 : index
    %46 = vector.load %arg9[%c0_17, %c0_18] : memref<8x256xf32, #tpu.memory_space<vmem>>, vector<8x256xf32>
    tpu.vector_store %arg9[%c0_17, %c0_18], %45 {strides = array<i32>} : memref<8x256xf32, #tpu.memory_space<vmem>>, vector<8x256xf32>,
    %c0_19 = arith.constant 0 : index
    %c0_20 = arith.constant 0 : index
    %47 = vector.load %arg11[%c0_19, %c0_20] : memref<8x256xf32, #tpu.memory_space<vmem>>, vector<8x256xf32>
    %cst_21 = arith.constant 1.000000e+00 : f32
    %cst_22 = arith.constant 0.000000e+00 : f32
    %48 = vector.broadcast %cst_21 : f32 to vector<8x256xf32>
    %49 = vector.broadcast %cst_22 : f32 to vector<8x256xf32>
    %50 = arith.select %38, %48, %49 : vector<8x256xi1>, vector<8x256xf32>
    %51 = arith.addf %47, %50 : vector<8x256xf32>
    %c0_23 = arith.constant 0 : index
    %c0_24 = arith.constant 0 : index
    %52 = vector.load %arg11[%c0_23, %c0_24] : memref<8x256xf32, #tpu.memory_space<vmem>>, vector<8x256xf32>
    tpu.vector_store %arg11[%c0_23, %c0_24], %51 {strides = array<i32>} : memref<8x256xf32, #tpu.memory_space<vmem>>, vector<8x256xf32>,
    %c0_25 = arith.constant 0 : index
    %c0_26 = arith.constant 0 : index
    %53 = vector.load %arg10[%c0_25, %c0_26] : memref<8x256xf32, #tpu.memory_space<vmem>>, vector<8x256xf32>
    %54 = vector.broadcast %33 : vector<1x256xf32> to vector<8x256xf32>
    %55 = arith.subf %54, %4 : vector<8x256xf32>
    %cst_27 = arith.constant 0.000000e+00 : f32
    %56 = vector.broadcast %cst_27 : f32 to vector<8x256xf32>
    %57 = arith.select %38, %55, %56 : vector<8x256xi1>, vector<8x256xf32>
    %58 = arith.addf %53, %57 : vector<8x256xf32>
    %c0_28 = arith.constant 0 : index
    %c0_29 = arith.constant 0 : index
    %59 = vector.load %arg10[%c0_28, %c0_29] : memref<8x256xf32, #tpu.memory_space<vmem>>, vector<8x256xf32>
    tpu.vector_store %arg10[%c0_28, %c0_29], %58 {strides = array<i32>} : memref<8x256xf32, #tpu.memory_space<vmem>>, vector<8x256xf32>,
    %c0_i32_30 = arith.constant 0 : i32
    %60 = arith.cmpi eq, %arg2, %c0_i32_30 : i32
    %61 = arith.extui %60 : i1 to i32
    %c0_i32_31 = arith.constant 0 : i32
    %62 = arith.cmpi ne, %61, %c0_i32_31 : i32
    scf.if %62 {
      %c0_32 = arith.constant 0 : index
      %c0_33 = arith.constant 0 : index
      %63 = vector.load %arg9[%c0_32, %c0_33] : memref<8x256xf32, #tpu.memory_space<vmem>>, vector<8x256xf32>
      %cst_34 = arith.constant dense<0.000000e+00> : vector<8xf32>
      %64 = vector.multi_reduction <add>, %63, %cst_34 [1] : vector<8x256xf32> to vector<8xf32>
      %65 = vector.shape_cast %64 : vector<8xf32> to vector<8x1xf32>
      %c0_35 = arith.constant 0 : index
      %c0_36 = arith.constant 0 : index
      %c0_37 = arith.constant 0 : index
      %c0_38 = arith.constant 0 : index
      %66 = vector.load %arg6[%c0_35, %c0_36, %c0_37, %c0_38] : memref<1x1x8x1xf32, #tpu.memory_space<vmem>>, vector<1x1x8x1xf32>
      %67 = vector.shape_cast %66 : vector<1x1x8x1xf32> to vector<8x1xf32>
      %68 = vector.shape_cast %65 : vector<8x1xf32> to vector<1x1x8x1xf32>
      tpu.vector_store %arg6[%c0_35, %c0_36, %c0_37, %c0_38], %68 {strides = array<i32>} : memref<1x1x8x1xf32, #tpu.memory_space<vmem>>, vector<1x1x8x1xf32>,
      %c0_39 = arith.constant 0 : index
      %c0_40 = arith.constant 0 : index
      %69 = vector.load %arg10[%c0_39, %c0_40] : memref<8x256xf32, #tpu.memory_space<vmem>>, vector<8x256xf32>
      %cst_41 = arith.constant dense<0.000000e+00> : vector<8xf32>
      %70 = vector.multi_reduction <add>, %69, %cst_41 [1] : vector<8x256xf32> to vector<8xf32>
      %71 = vector.shape_cast %70 : vector<8xf32> to vector<8x1xf32>
      %c0_42 = arith.constant 0 : index
      %c0_43 = arith.constant 0 : index
      %c0_44 = arith.constant 0 : index
      %c0_45 = arith.constant 0 : index
      %72 = vector.load %arg7[%c0_42, %c0_43, %c0_44, %c0_45] : memref<1x1x8x1xf32, #tpu.memory_space<vmem>>, vector<1x1x8x1xf32>
      %73 = vector.shape_cast %72 : vector<1x1x8x1xf32> to vector<8x1xf32>
      %74 = vector.shape_cast %71 : vector<8x1xf32> to vector<1x1x8x1xf32>
      tpu.vector_store %arg7[%c0_42, %c0_43, %c0_44, %c0_45], %74 {strides = array<i32>} : memref<1x1x8x1xf32, #tpu.memory_space<vmem>>, vector<1x1x8x1xf32>,
      %c0_46 = arith.constant 0 : index
      %c0_47 = arith.constant 0 : index
      %75 = vector.load %arg11[%c0_46, %c0_47] : memref<8x256xf32, #tpu.memory_space<vmem>>, vector<8x256xf32>
      %cst_48 = arith.constant dense<0.000000e+00> : vector<8xf32>
      %76 = vector.multi_reduction <add>, %75, %cst_48 [1] : vector<8x256xf32> to vector<8xf32>
      %77 = vector.shape_cast %76 : vector<8xf32> to vector<8x1xf32>
      %c0_49 = arith.constant 0 : index
      %c0_50 = arith.constant 0 : index
      %c0_51 = arith.constant 0 : index
      %c0_52 = arith.constant 0 : index
      %78 = vector.load %arg8[%c0_49, %c0_50, %c0_51, %c0_52] : memref<1x1x8x1xf32, #tpu.memory_space<vmem>>, vector<1x1x8x1xf32>
      %79 = vector.shape_cast %78 : vector<1x1x8x1xf32> to vector<8x1xf32>
      %80 = vector.shape_cast %77 : vector<8x1xf32> to vector<1x1x8x1xf32>
      tpu.vector_store %arg8[%c0_49, %c0_50, %c0_51, %c0_52], %80 {strides = array<i32>} : memref<1x1x8x1xf32, #tpu.memory_space<vmem>>, vector<1x1x8x1xf32>,
    } else {
    }
    return
  }
  func.func @transform_0(%arg0: i32, %arg1: i32, %arg2: i32) -> (i32, i32, i32) {
    %c1_i32 = arith.constant 1 : i32
    %0 = arith.muli %arg0, %c1_i32 : i32
    %1 = arith.addi %0, %arg2 : i32
    %c0_i32 = arith.constant 0 : i32
    %c0_i32_0 = arith.constant 0 : i32
    return %arg1, %c0_i32, %1 : i32, i32, i32
  }
  func.func @transform_1(%arg0: i32, %arg1: i32, %arg2: i32) -> (i32, i32, i32) {
    %c1_i32 = arith.constant 1 : i32
    %0 = arith.muli %arg0, %c1_i32 : i32
    %1 = arith.addi %0, %arg2 : i32
    %c0_i32 = arith.constant 0 : i32
    %c0_i32_0 = arith.constant 0 : i32
    return %arg1, %c0_i32, %1 : i32, i32, i32
  }
  func.func @transform_2(%arg0: i32, %arg1: i32, %arg2: i32) -> (i32, i32, i32) {
    %c1_i32 = arith.constant 1 : i32
    %0 = arith.muli %arg0, %c1_i32 : i32
    %1 = arith.addi %0, %arg2 : i32
    %c0_i32 = arith.constant 0 : i32
    %c0_i32_0 = arith.constant 0 : i32
    return %arg1, %c0_i32, %1 : i32, i32, i32
  }
  func.func @transform_3(%arg0: i32, %arg1: i32, %arg2: i32) -> (i32, i32, i32, i32) {
    %c0_i32 = arith.constant 0 : i32
    %c0_i32_0 = arith.constant 0 : i32
    %c0_i32_1 = arith.constant 0 : i32
    return %arg0, %arg1, %c0_i32, %c0_i32_0 : i32, i32, i32, i32
  }
  func.func @transform_4(%arg0: i32, %arg1: i32, %arg2: i32) -> (i32, i32, i32, i32) {
    %c0_i32 = arith.constant 0 : i32
    %c0_i32_0 = arith.constant 0 : i32
    %c0_i32_1 = arith.constant 0 : i32
    return %arg0, %arg1, %c0_i32, %c0_i32_0 : i32, i32, i32, i32
  }
  func.func @transform_5(%arg0: i32, %arg1: i32, %arg2: i32) -> (i32, i32, i32, i32) {
    %c0_i32 = arith.constant 0 : i32
    %c0_i32_0 = arith.constant 0 : i32
    %c0_i32_1 = arith.constant 0 : i32
    return %arg0, %arg1, %c0_i32, %c0_i32_0 : i32, i32, i32, i32
  }
}

</mosaic_0001>

<bundles_post_ra>
// kernel: tpu_custom_call.1
= control target key start
LH: loop header
LB: loop body
LE: loop exit
PB: predicated region body
PF: predicated region fallthrough
CT: control target
= control target key end

     0   :  { %11 = vsyncpa [#allocation6], 0  ;;  %s1385_s0 = inlined_call_operand.hbm [shape: f32[2,8,256], index: 0, kind: input, shape index: {}]   ;;  %s1386_s1 = inlined_call_operand.hbm [shape: s32[2,1,256], index: 1, kind: input, shape index: {}]   ;;  %s1387_s2 = inlined_call_operand.hbm [shape: f32[2,2,256], index: 2, kind: input, shape index: {}]   ;;  %s1388_s3 = inlined_call_operand.vmem [shape: f32[1,2,8,1], index: 3, kind: output, shape index: {0}]   ;;  %s1389_s4 = inlined_call_operand.vmem [shape: f32[1,2,8,1], index: 4, kind: output, shape index: {1}]   ;;  %s1390_s5 = inlined_call_operand.vmem [shape: f32[1,2,8,1], index: 5, kind: output, shape index: {2}]  }
   0x1   :  { %13 = vsyncpa [#allocation6 + $0x1], 0 }
   0x2   :  { %14 = vsyncpa [#allocation8], 0 }
   0x3   :  { %16 = vsyncpa [#allocation8 + $0x1], 0  ;;  %s1118_s18 = smov 0   ;;  %s1120_s19 = smov 0  }
   0x4   :  { %s1122_s20 = smov 0   ;;  %s1124_s21 = smov 0  }
   0x5   :  { %s1126_s22 = smov 0   ;;  %s1128_s23 = smov 0  }
   0x6 LB: > { %s1392_s24 = sadd.s32 4294967295, %s1081_s23   ;;  %s37_s25 = sadd.s32 1, %s1077_s22  ;;  %s1081_s23 = sphi %s1128_s23, %s22_s23   ;;  %s1077_s22 = sphi %s1126_s22, %s1413_s22   ;;  %s1073_s21 = sphi %s1124_s21, %s1412_s21   ;;  %s1069_s20 = sphi %s1122_s20, %s1411_s20   ;;  %s1065_s19 = sphi %s1120_s19, %s1410_s19   ;;  %s1061_s18 = sphi %s1118_s18, %s1409_s18  }
   0x7   : > { %p39_p0 = scmp.ge.s32.totalorder %s37_s25, 2  ;;  %s52_s26 = sadd.s32 1, %s1069_s20 }
   0x8   : > { %p59_p1 = scmp.ne.s32.totalorder %s1069_s20, %s1065_s19  ;;  %p60_p2 = scmp.eq.s32.totalorder %s1081_s23, 0 }
   0x9   : > { %s1415_s25 = smov (%p39_p0, %s37_s25), 0  ;;  %p65_p4 = scmp.ne.s32.totalorder %s1065_s19, %s1061_s18 }
   0xa   : > { %p61_p3 = por %p60_p2, %p59_p1  ;;  %s47_s27 = ssub.s32 %s1077_s22, %s1415_s25 }
   0xb   : > { %p66_p5 = scmp.eq.s32.totalorder %s1392_s24, 0  ;;  %p50_p6 = scmp.eq.s32.totalorder %s47_s27, 0 }
   0xc   : > { %p878_p8 = scmp.lt.s32.totalorder %s1081_s23, 2  ;;  %s1168_s30 = sand.u32 1, %s1069_s20  }
   0xd   : > { %p1159_p7 = por %p66_p5, %p65_p4  ;;  %s255_s7 = sand.u32 1, %s1081_s23  }
   0xe   : > { %s1165_s29 = scalar_select %p50_p6, %s1069_s20, %s52_s26  }
   0xf   : > { %s1394_s28 = scalar_select %p1159_p7, 1, 0 }
  0x10   : > { %p1170_p9 = pnand %p878_p8, %p61_p3  ;;  %s843_s8 = sshll.u32 %s1168_s30, 1 }
  0x11   : > { %s860_s9 = sshll.u32 %s1077_s22, 5  ;;  %s259_s13 = scalar_lea.vmem [#allocation7], %s843_s8 }
  0x12   : > { %s1395_s6 = scalar_select %p1170_p9, 1, 0 }
  0x13   : > { %s1180_s12 = scalar_lea.hbm %s1386_s1, %s860_s9  ;;  %s270_s14 = sshll.u32 %s259_s13, 4  ;;  %s1182_s14 = int_to_ptr.vmem [resolvable:$true] %s270_s14 }
  0x14   : > { %s1185_s15 = scalar_lea.sflag [#allocation8], %s255_s7  ;;  %s937_s16 = scalar_lea.hbm %s1180_s12, 32 }
  0x15   : > { %p938_p11 = scmp.ne.s32.totalorder %s1180_s12, %s937_s16  ;;  %p1191_p12 = pneg %p1170_p9 }
  0x16   : > { %s942_s27 = scalar_lea.hbm %s1386_s1, 64  ;;  %p943_p1 = scmp.lt.u32.totalorder %s1180_s12, %s1386_s1 }
  0x17   : > { %p940_p13 = pnand %p1191_p12, %p938_p11  ;;  %p944_p2 = scmp.lt.u32.totalorder %s942_s27, %s937_s16 }
  0x18   : > { %p946_p4 = scmp.lt.u32.totalorder %s937_s16, %s1180_s12 }
  0x19   : > { %p941_p0 = pneg %p940_p13  ;;  %p945_p3 = por %p944_p2, %p943_p1 }
  0x1b   : > { %p947_p5 = por %p946_p4, %p945_p3 }
  0x1d   : > { %p948_p6 = pnand %p947_p5, %p941_p0 }
  0x1f   : > { %951 = shalt.err (!%p948_p6)
}
  0x20   : > { %s952_s7 = scalar_lea.vmem %s1182_s14, 32  ;;  %s1083_s10 = smov [#allocation7]  }
  0x21   : > { %p953_p8 = scmp.ne.s32.totalorder %s1182_s14, %s952_s7  ;;  %s957_s11 = sshll.u32 %s1083_s10, 4  ;;  %s958_s11 = int_to_ptr.vmem [resolvable:$false] %s957_s11 }
  0x22   : > { %s959_s13 = scalar_lea.vmem %s958_s11, 64  ;;  %p960_p10 = scmp.lt.s32.totalorder %s1182_s14, %s958_s11 }
  0x23   : > { %p955_p11 = pnand %p953_p8, %p1191_p12  ;;  %p961_p7 = scmp.lt.s32.totalorder %s959_s13, %s952_s7 }
  0x25   : > { %p956_p13 = pneg %p955_p11  ;;  %p962_p1 = por %p961_p7, %p960_p10 }
  0x27   : > { %p963_p2 = pnand %p962_p1, %p956_p13 }
  0x29   : > { %966 = shalt.err (!%p963_p2)
}
  0x2a   : > { %874 = dma.hbm_to_vmem [thread:$0]  (!%p1170_p9), %s1180_s12, 32, %s1182_s14, %s1185_s15  }
  0x2b   : > { %p297_p0 = scmp.lt.s32.totalorder %s1081_s23, 3  ;;  %p1397_p3 = scmp.ge.s32.totalorder %s1081_s23, 1 }
  0x2c   : > { %s840_s18 = sshll.u32 %s1168_s30, 4  ;;  %s859_s26 = sshll.u32 %s1077_s22, 8 }
  0x2d   : > { %p1218_p4 = pnand %p1397_p3, %p297_p0  ;;  %s1227_s9 = scalar_lea.hbm %s1385_s0, %s859_s26 }
  0x2e   : > { %s237_s7 = scalar_lea.vmem [#allocation5], %s840_s18  ;;  %s846_s12 = sshll.u32 %s1168_s30, 2 }
  0x2f   : > { %s1398_s16 = scalar_select %p1218_p4, 1, 0 }
  0x30   : > { %s248_s10 = sshll.u32 %s237_s7, 4  ;;  %s234_s14 = scalar_lea.sflag [#allocation6], %s1168_s30  ;;  %s1229_s10 = int_to_ptr.vmem [resolvable:$true] %s248_s10 }
  0x31   : > { %s967_s11 = scalar_lea.hbm %s1227_s9, 256  ;;  %s972_s26 = scalar_lea.hbm %s1385_s0, 512 }
  0x32   : > { %p968_p7 = scmp.ne.s32.totalorder %s1227_s9, %s967_s11  ;;  %p973_p6 = scmp.lt.u32.totalorder %s1227_s9, %s1385_s0 }
  0x33   : > { %p974_p8 = scmp.lt.u32.totalorder %s972_s26, %s967_s11  ;;  %p976_p13 = scmp.lt.u32.totalorder %s967_s11, %s1227_s9 }
  0x34   : > { %p970_p10 = pnand %p968_p7, %p1191_p12 }
  0x35   : > { %p975_p11 = por %p974_p8, %p973_p6 }
  0x36   : > { %p971_p5 = pneg %p970_p10 }
  0x37   : > { %p977_p1 = por %p976_p13, %p975_p11 }
  0x39   : > { %p978_p2 = pnand %p977_p1, %p971_p5 }
  0x3b   : > { %981 = shalt.err (!%p978_p2)
}
  0x3c   : > { %s982_s18 = scalar_lea.vmem %s1229_s10, 256  ;;  %s1084_s24 = smov [#allocation5]  }
  0x3d   : > { %p983_p0 = scmp.ne.s32.totalorder %s1229_s10, %s982_s18  ;;  %s987_s7 = sshll.u32 %s1084_s24, 4  ;;  %s988_s7 = int_to_ptr.vmem [resolvable:$false] %s987_s7 }
  0x3e   : > { %s989_s13 = scalar_lea.vmem %s988_s7, 512  ;;  %p990_p10 = scmp.lt.s32.totalorder %s1229_s10, %s988_s7 }
  0x3f   : > { %p985_p3 = pnand %p983_p0, %p1191_p12  ;;  %p991_p4 = scmp.lt.s32.totalorder %s989_s13, %s982_s18 }
  0x41   : > { %p986_p7 = pneg %p985_p3  ;;  %p992_p6 = por %p991_p4, %p990_p10 }
  0x43   : > { %p993_p8 = pnand %p992_p6, %p986_p7 }
  0x45   : > { %996 = shalt.err (!%p993_p8)
}
  0x46   : > { %871 = dma.hbm_to_vmem [thread:$0]  (!%p1170_p9), %s1227_s9, 256, %s1229_s10, %s234_s14  }
  0x47   : > { %s861_s11 = sshll.u32 %s1077_s22, 6  ;;  %s281_s18 = scalar_lea.vmem [#allocation9], %s846_s12 }
  0x48   : > { %s1258_s8 = scalar_lea.hbm %s1387_s2, %s861_s11  ;;  %s292_s24 = sshll.u32 %s281_s18, 4  ;;  %s293_s24 = int_to_ptr.vmem [resolvable:$true] %s292_s24 }
  0x49   : > { %s997_s7 = scalar_lea.hbm %s1258_s8, 64  ;;  %s1002_s14 = scalar_lea.hbm %s1387_s2, 128 }
  0x4a   : > { %p998_p4 = scmp.ne.s32.totalorder %s1258_s8, %s997_s7  ;;  %p1003_p13 = scmp.lt.u32.totalorder %s1258_s8, %s1387_s2 }
  0x4b   : > { %p1004_p1 = scmp.lt.u32.totalorder %s1002_s14, %s997_s7  ;;  %p1006_p0 = scmp.lt.u32.totalorder %s997_s7, %s1258_s8 }
  0x4c   : > { %p1000_p5 = pnand %p998_p4, %p1191_p12 }
  0x4d   : > { %p1005_p2 = por %p1004_p1, %p1003_p13 }
  0x4e   : > { %p1001_p11 = pneg %p1000_p5 }
  0x4f   : > { %p1007_p3 = por %p1006_p0, %p1005_p2 }
  0x51   : > { %p1008_p7 = pnand %p1007_p3, %p1001_p11 }
  0x53   : > { %1011 = shalt.err (!%p1008_p7)
}
  0x54   : > { %s1012_s30 = scalar_lea.vmem %s293_s24, 64  ;;  %s1085_s12 = smov [#allocation9]  }
  0x55   : > { %p1013_p10 = scmp.ne.s32.totalorder %s293_s24, %s1012_s30  ;;  %s1017_s26 = sshll.u32 %s1085_s12, 4  ;;  %s1018_s26 = int_to_ptr.vmem [resolvable:$false] %s1017_s26 }
  0x56   : > { %s1019_s27 = scalar_lea.vmem %s1018_s26, 128  ;;  %p1020_p4 = scmp.lt.s32.totalorder %s293_s24, %s1018_s26 }
  0x57   : > { %p1015_p6 = pnand %p1013_p10, %p1191_p12  ;;  %p1021_p5 = scmp.lt.s32.totalorder %s1019_s27, %s1012_s30 }
  0x59   : > { %p1016_p8 = pneg %p1015_p6  ;;  %p1022_p9 = por %p1021_p5, %p1020_p4 }
  0x5b   : > { %p1023_p1 = pnand %p1022_p9, %p1016_p8 }
  0x5d   : > { %1026 = shalt.err (!%p1023_p1)
}
  0x5e   : > { %p1399_p13 = scmp.ne.s32.totalorder %s1395_s6, 0  ;;  %p1400_p11 = scmp.ne.s32.totalorder %s1398_s16, 0 }
  0x5f   : > { %s303_s17 = sand.u32 (!%p1400_p11), 1, %s1065_s19   ;;  %p1401_p12 = scmp.ne.s32.totalorder (!%p1400_p11), %s1394_s28, 0 }
  0x60   : > { %877 = dma.hbm_to_vmem [thread:$0]  (!%p1399_p13), %s1258_s8, 64, %s293_s24, %s1185_s15  }
  0x61   : > { %301 = sbr.rel (%p1400_p11) target bundleno = 315 (0x13b), region = 32  ;;  %s850_s18 = sshll.u32 (!%p1400_p11), %s303_s17, 4 }
  0x62   : > { %s304_s7 = scalar_lea.sflag (!%p1400_p11), [#allocation6], %s303_s17  ;;  %s307_s9 = scalar_lea.vmem (!%p1400_p11), [#allocation5], %s850_s18 }
  0x68   : > { %1052 = dma.done.wait (%p1401_p12), %s304_s7, 256  }
  0x69   : > { %1054 = vsyncadd (%p1401_p12), %s304_s7, 4294967040  ;;  %s1402_s10 = sadd.s32 4294967295, %s1081_s23   ;;  %s851_s14 = sshll.u32 %s303_s17, 1 }
  0x6a   : > { %s312_s6 = sand.u32 1, %s1402_s10   ;;  %s316_s8 = scalar_lea.vmem [#allocation7], %s851_s14 }
  0x6b   : > { %s313_s15 = scalar_lea.sflag [#allocation8], %s312_s6 }
  0x6c   : > { %1056 = dma.done.wait (%p1401_p12), %s313_s15, 96  }
  0x6d   : > { %1058 = vsyncadd (%p1401_p12), %s313_s15, 4294967200  ;;  %v467_v0 = vlaneseq  ;;  %s852_s16 = sshll.u32 %s303_s17, 2  ;;  %vm446_vm0 = vcmask 1041408   ;;  %v423_v4 = vld [vmem:[%s316_s8] sm:$0x3]  ;;  %v1302_v10 = vld [vmem:[%s307_s9 + $0x8] sm:$0xff] }
  0x6e   : > { %s325_s24 = scalar_lea.vmem [#allocation9], %s852_s16  ;;  %v1300_v9 = vld [vmem:[%s307_s9] sm:$0xff]  ;;  %vm465_vm1 = vcmp.ne.s32.totalorder %v423_v4, 255  ;;  %v485_v13 = vrot.slane %v1302_v10, 4  ;;  %v1086_v17 = vmov 0.0   ;;  %v1087_v25 = vmov 0  }
  0x6f   : > { %v1293_v1 = vshrl.u32 %v467_v0, 7  ;;  %v856_v5 = vld.sshfl [vmem:[%s325_s24] sm:$0x33 pattern:$0x76325410]  ;;  %v479_v12 = vrot.slane %v1300_v9, 4 }
  0x70   : > { %v443_v8 = vcombine.high %v856_v5, %v856_v5  ;;  %v447_v11 = vsel %vm446_vm0, %v856_v5, -inf  ;;  %v466_v26 = vsel %vm465_vm1, 1, %v1087_v25  ;;  %v486_v27 = vmax.f32 %v1302_v10, %v485_v13  ;;  %p389_p9 = scmp.lt.s32.totalorder %s1073_s21, 1 }
  0x71   : > { %v1296_v2 = vsub.s32 0, %v1293_v1  ;;  %v473_v3 = vsub.s32 1, %v1293_v1  ;;  %v448_v15 = vrot.slane %v447_v11, 4  ;;  %v480_v23 = vmax.f32 %v1300_v9, %v479_v12 }
  0x72   : > { %v454_v16 = vsel %vm446_vm0, %v443_v8, -inf  ;;  %v487_v31 = vrot.slane %v486_v27, 2  ;;  %s1417_s21 = smov (!%p389_p9, %s1073_s21), 1  ;;  %vm581_vm14 = vcmask 7168  }
  0x73   : > { %v520_v6 = vrot.slane %v423_v4, %v1296_v2  ;;  %v524_v7 = vrot.slane %v423_v4, %v473_v3  ;;  %v455_v20 = vrot.slane %v454_v16, 4  ;;  %v449_v22 = vmax.f32 %v447_v11, %v448_v15  ;;  %s853_s28 = sshll.u32 %s1417_s21, 3 }
  0x74   : > { %v481_v29 = vrot.slane %v480_v23, 2  ;;  %v470_v33 = vrot.slane %v466_v26, %v1296_v2  ;;  %v474_v36 = vrot.slane %v466_v26, %v473_v3  ;;  %v488_v37 = vmax.f32 %v486_v27, %v487_v31  ;;  %s394_s30 = scalar_lea.vmem %s1388_s3, %s853_s28  ;;  %s410_s27 = scalar_lea.vmem %s1390_s5, %s853_s28 }
  0x75   : > { %vm1308_vm2 = vcmp.eq.s32.totalorder %v1293_v1, %v520_v6  ;;  %vm526_vm3 = vcmp.eq.s32.totalorder %v1293_v1, %v524_v7  ;;  %v456_v24 = vmax.f32 %v454_v16, %v455_v20  ;;  %v450_v28 = vrot.slane %v449_v22, 2  ;;  %s402_s7 = scalar_lea.vmem %s1389_s4, %s853_s28 }
  0x76   : > { %v549_v18 = vsel %vm1308_vm2, 1.0, %v1086_v17  ;;  %v550_v19 = vsel %vm526_vm3, 1.0, %v1086_v17  ;;  %v482_v34 = vmax.f32 %v480_v23, %v481_v29  ;;  %v489_v41 = vrot.slane %v488_v37, 1 }
  0x77   : > { %v578_v21 = vadd.f32 %v550_v19, %v549_v18  ;;  %v457_v30 = vrot.slane %v456_v24, 2  ;;  %v451_v32 = vmax.f32 %v449_v22, %v450_v28  ;;  %vm475_vm4 = vcmp.ne.s32.totalorder %v470_v33, 0 }
  0x78   : > { %v483_v39 = vrot.slane %v482_v34, 1  ;;  %vm476_vm5 = vcmp.ne.s32.totalorder %v474_v36, 0  ;;  %v490_v45 = vmax.f32 %v488_v37, %v489_v41 }
  0x79   : > { %579 = vadd.xlane.f32.xlu0 %v578_v21  ;;  %v458_v35 = vmax.f32 %v456_v24, %v457_v30  ;;  %v452_v38 = vrot.slane %v451_v32, 1 }
  0x7a   : > { %v484_v43 = vmax.f32 %v482_v34, %v483_v39  ;;  %v492_v47 = vsub.f32 %v1302_v10, %v490_v45 }
  0x7b   : > { %v459_v40 = vrot.slane %v458_v35, 1  ;;  %v453_v42 = vmax.f32 %v451_v32, %v452_v38 }
  0x7c   : > { %v491_v46 = vsub.f32 %v1300_v9, %v484_v43  ;;  %v495_v52 = vmul.f32 1.442695, %v492_v47 }
  0x7d   : > { %v460_v44 = vmax.f32 %v458_v35, %v459_v40  ;;  %vm461_vm6 = vcmp.gt.f32.partialorder %v453_v42, 1.3862944 }
  0x7e   : > { %vm477_vm8 = vmand %vm461_vm6, %vm475_vm4  ;;  %v493_v49 = vmul.f32 1.442695, %v491_v46 }
  0x7f   : > { %vm462_vm7 = vcmp.gt.f32.partialorder %v460_v44, 1.3862944  ;;  %v527_v48 = vsel %vm477_vm8, 1, %v1087_v25 }
  0x80   : > { %vm478_vm9 = vmand %vm462_vm7, %vm476_vm5  ;;  %v532_v51 = vrot.slane %v527_v48, %v1296_v2  ;;  %929 = vpow2.f32 %v493_v49 }
  0x81   : > { %v528_v50 = vsel %vm478_vm9, 1, %v1087_v25  ;;  %931 = vpow2.f32 %v495_v52 }
  0x82   : > { %v536_v53 = vrot.slane %v528_v50, %v1296_v2  ;;  %vm1326_vm10 = vcmp.eq.s32.totalorder %v532_v51, 1 }
  0x83   : > { %vm539_vm12 = vmand %vm1308_vm2, %vm1326_vm10 }
  0x84   : > { %vm538_vm11 = vcmp.eq.s32.totalorder %v536_v53, 1  ;;  %v557_v56 = vsel %vm539_vm12, 1.0, %v1086_v17 }
  0x85   : > { %vm1336_vm13 = vmand %vm526_vm3, %vm538_vm11 }
  0x86   : > { %v558_v57 = vsel %vm1336_vm13, 1.0, %v1086_v17 }
  0x87   : > { %v591_v58 = vadd.f32 %v558_v57, %v557_v56 }
  0x89   : > { %592 = vadd.xlane.f32.xlu1 %v591_v58 }
  0x8a   : > { %v930_v59 = vpop.eup %929 }
  0x8b   : > { %v932_v60 = vpop.eup %931  ;;  %v497_v61 = vrot.slane %v930_v59, 4 }
  0x8c   : > { %v503_v62 = vrot.slane %v932_v60, 4 }
  0x8d   : > { %v498_v63 = vadd.f32 %v930_v59, %v497_v61 }
  0x8e   : > { %v504_v0 = vadd.f32 %v932_v60, %v503_v62 }
  0x8f   : > { %v499_v1 = vrot.slane %v498_v63, 2 }
  0x90   : > { %v505_v2 = vrot.slane %v504_v0, 2 }
  0x91   : > { %v500_v3 = vadd.f32 %v499_v1, %v498_v63 }
  0x92   : > { %v506_v4 = vadd.f32 %v505_v2, %v504_v0 }
  0x93   : > { %v501_v5 = vrot.slane %v500_v3, 1 }
  0x94   : > { %v507_v6 = vrot.slane %v506_v4, 1 }
  0x95   : > { %v502_v7 = vadd.f32 %v501_v5, %v500_v3 }
  0x96   : > { %v508_v8 = vadd.f32 %v507_v6, %v506_v4 }
  0x97   : > { %933 = vlog2.f32 %v502_v7 }
  0x98   : > { %935 = vlog2.f32 %v508_v8 }
  0xa1   : > { %v934_v11 = vpop.eup %933 }
  0xa2   : > { %v936_v12 = vpop.eup %935  ;;  %v510_v13 = vmul.f32 0.6931472, %v934_v11 }
  0xa3   : > { %v512_v15 = vmul.f32 0.6931472, %v936_v12 }
  0xa4   : > { %v513_v16 = vadd.f32 %v510_v13, %v484_v43 }
  0xa5   : > { %v514_v17 = vadd.f32 %v512_v15, %v490_v45 }
  0xa6   : > { %v565_v18 = vsub.f32 %v513_v16, %v1300_v9 }
  0xa7   : > { %v566_v19 = vsub.f32 %v514_v17, %v1302_v10 }
  0xa8   : > { %v567_v20 = vsel %vm539_vm12, %v565_v18, 0.0 }
  0xa9   : > { %v568_v21 = vsel %vm1336_vm13, %v566_v19, 0.0 }
  0xaa   : > { %v585_v22 = vadd.f32 %v568_v21, %v567_v20 }
  0xac   : > { %586 = vadd.xlane.f32.xlu0 %v585_v22 }
 0x106   : > { %v580_v9 = vpop.xlane.xlu0 %579 }
 0x107   : > { %582 = vst.msk [vmem:[%s394_s30] sm:$0xff] %vm581_vm14, %v580_v9 }
 0x116   : > { %v593_v10 = vpop.xlane.xlu1 %592 }
 0x117   : > { %594 = vst.msk [vmem:[%s410_s27] sm:$0xff] %vm581_vm14, %v593_v10 }
 0x139   : > { %v587_v14 = vpop.xlane.xlu0 %586 }
 0x13a   : > { %588 = vst.msk [vmem:[%s402_s7] sm:$0xff] %vm581_vm14, %v587_v14 }
 0x13b PF: > { %s22_s23 = sadd.s32 1, %s1081_s23   ;;  %s1409_s18 = smov %s1065_s19 }
 0x13c   : > { %p19_p2 = scmp.ge.s32.totalorder %s22_s23, 4   ;;  %s1410_s19 = smov %s1069_s20 }
 0x13d   : > { %s1411_s20 = smov %s1165_s29  ;;  %s1412_s21 = smov %s1077_s22 }
 0x13e   : > { %s1413_s22 = smov %s1415_s25  ;;  %21 = sbr.rel (!%p19_p2) target bundleno = 6 (0x6), region = 128 }
 0x145   :  { %666 = vsyncpa [#allocation6], 1 }
 0x146   :  { %668 = vsyncpa [#allocation6 + $0x1], 1 }
 0x147   :  { %669 = vsyncpa [#allocation8], 1 }
 0x148   :  { %671 = vsyncpa [#allocation8 + $0x1], 1 }

</bundles_post_ra>
